<compile_context>
chip_gen: v7x
topology: tpu7x:2x2x1
jax: 0.10.0
libtpu: 0.0.40
codegen_flags: <defaults>
</compile_context>

<pallas_src>
import functools

import jax
import jax.numpy as jnp
from jax.experimental import pallas as pl
from jax.experimental.pallas import tpu as pltpu


def _tv_kernel(x_ref, out_ref, carry_ref, *, h, w, th):
    # x_ref:     (1, 1, th, w)  input row tile of one (batch, channel) plane
    # out_ref:   (1, 1, 1, w)   f32 per-plane column partial sums (resident over j)
    # carry_ref: (1, w)         f32 last row of the previous row tile (seam halo)
    j = pl.program_id(2)

    tile = x_ref[0, 0, :, :].astype(jnp.float32)              # (th, w)

    row0 = j * th
    lrows = jax.lax.broadcasted_iota(jnp.int32, (th, w), 0)    # local row index
    grows = lrows + row0                                       # global row index
    gcols = jax.lax.broadcasted_iota(jnp.int32, (th, w), 1)    # global col index

    # Vertical neighbour diffs: rolled[r] == tile[r+1]  (roll by th-1 == roll by -1).
    up = pltpu.roll(tile, th - 1, axis=0) if th > 1 else tile
    dh = jnp.abs(tile - up)
    dh_ok = jnp.logical_and(lrows < th - 1, grows < h - 1)

    # Horizontal neighbour diffs: rolled[c] == tile[:, c+1].
    left = pltpu.roll(tile, w - 1, axis=1) if w > 1 else tile
    dw = jnp.abs(tile - left)
    dw_ok = jnp.logical_and(gcols < w - 1, grows < h)

    # Single combined masked sum (one reduction instead of two).
    contrib = jnp.where(dh_ok, dh, 0.0) + jnp.where(dw_ok, dw, 0.0)

    # Seam between the previous tile's last row and this tile's first row.
    first_row = tile[0:1, :]                                   # (1, w)
    seam = jnp.where(j > 0, jnp.abs(first_row - carry_ref[...]), 0.0)
    carry_ref[...] = tile[th - 1:th, :]                        # save halo for next tile

    col_partial = jnp.sum(contrib, axis=0, keepdims=True) + seam   # (1, w)

    @pl.when(j == 0)
    def _():
        out_ref[...] = jnp.zeros_like(out_ref)

    out_ref[...] += col_partial.reshape(1, 1, 1, w)


def tv_loss_segment(x, tvloss_weight=1e-5, row_tile=None):
    """Pallas implementation of TVLossSegment.forward (x is NCHW)."""
    b, c, h, w = x.shape
    assert c >= 3, "module indexes channels 0 and 2"

    # Choose a row-tile height: full H if it fits comfortably, otherwise a
    # multiple of 8 sized for ~4 MiB per (double-buffered) input block.
    if row_tile is None:
        max_rows = max(8, ((4 * 1024 * 1024) // max(1, w * 4)) // 8 * 8)
        th = h if h <= max_rows else max_rows
    else:
        th = h if row_tile >= h else max(8, (row_tile // 8) * 8)
    nh = pl.cdiv(h, th)

    kernel = functools.partial(_tv_kernel, h=h, w=w, th=th)

    partials = pl.pallas_call(
        kernel,
        out_shape=jax.ShapeDtypeStruct((b, 2, 1, w), jnp.float32),
        grid_spec=pltpu.PrefetchScalarGridSpec(
            num_scalar_prefetch=0,
            grid=(b, 2, nh),
            in_specs=[
                # Index channels 0 and 2 of x directly; no HBM gather copy.
                pl.BlockSpec((1, 1, th, w), lambda bi, ci, j: (bi, 2 * ci, j, 0)),
            ],
            out_specs=pl.BlockSpec((1, 1, 1, w), lambda bi, ci, j: (bi, ci, 0, 0)),
            scratch_shapes=[pltpu.VMEM((1, w), jnp.float32)],
        ),
        compiler_params=pltpu.CompilerParams(
            dimension_semantics=("parallel", "parallel", "arbitrary"),
            vmem_limit_bytes=32 * 1024 * 1024,
        ),
    )(x)

    total = jnp.sum(partials)
    return (jnp.float32(tvloss_weight) * total / b).astype(jnp.float32)


def _reference(x, tvloss_weight=1e-5):
    xf = x.astype(jnp.float32)
    b = x.shape[0]
    h_tv = (jnp.sum(jnp.abs(xf[:, 0, 1:, :] - xf[:, 0, :-1, :]))
            + jnp.sum(jnp.abs(xf[:, 2, 1:, :] - xf[:, 2, :-1, :])))
    w_tv = (jnp.sum(jnp.abs(xf[:, 0, :, 1:] - xf[:, 0, :, :-1]))
            + jnp.sum(jnp.abs(xf[:, 2, :, 1:] - xf[:, 2, :, :-1])))
    return tvloss_weight * (h_tv + w_tv) / b


if __name__ == "__main__":
    key = jax.random.PRNGKey(0)

    # Case 1: the module's nominal small shape, single row tile per plane.
    x1 = jax.random.normal(key, (2, 4, 16, 16), dtype=jnp.float32)
    out1 = jax.block_until_ready(tv_loss_segment(x1))
    ref1 = jax.block_until_ready(_reference(x1))
    assert jnp.allclose(out1, ref1, rtol=1e-4, atol=1e-6), (out1, ref1)

    # Case 2: exercise the row-tiling + seam-carry path (partial last tile: H=20, TH=8).
    x2 = jax.random.normal(jax.random.PRNGKey(1), (2, 4, 20, 24), dtype=jnp.float32)
    out2 = jax.block_until_ready(tv_loss_segment(x2, row_tile=8))
    ref2 = jax.block_until_ready(_reference(x2))
    assert jnp.allclose(out2, ref2, rtol=1e-4, atol=1e-6), (out2, ref2)

    print("KERNEL_OK")
</pallas_src>

<mosaic_0001>
module attributes {stable_mosaic.version = 11 : i64} {
  func.func @_tv_kernel(%arg0: i32, %arg1: i32, %arg2: i32, %arg3: memref<1x1x16x16xf32, #tpu.memory_space<vmem>>, %arg4: memref<1x1x1x16xf32, #tpu.memory_space<vmem>>, %arg5: memref<1x16xf32, #tpu.memory_space<vmem>>) attributes {dimension_semantics = [#tpu.dimension_semantics<parallel>, #tpu.dimension_semantics<parallel>, #tpu.dimension_semantics<arbitrary>], iteration_bounds = array<i64: 2, 2, 1>, scalar_prefetch = 0 : i64, scratch_operands = 1 : i64, tpu.core_type = #tpu.core_type<tc>, window_params = [{transform_indices = @transform_0, window_bounds = array<i64: 1, 1, 16, 16>}, {transform_indices = @transform_1, window_bounds = array<i64: 1, 1, 1, 16>}]} {
    %c0 = arith.constant 0 : index
    %c0_0 = arith.constant 0 : index
    %c0_1 = arith.constant 0 : index
    %c0_2 = arith.constant 0 : index
    %0 = vector.load %arg3[%c0, %c0_0, %c0_1, %c0_2] : memref<1x1x16x16xf32, #tpu.memory_space<vmem>>, vector<1x1x16x16xf32>
    %1 = vector.shape_cast %0 : vector<1x1x16x16xf32> to vector<16x16xf32>
    %c16_i32 = arith.constant 16 : i32
    %2 = arith.muli %arg2, %c16_i32 : i32
    %3 = tpu.iota {dimensions = array<i32: 0>} : vector<16x16xi32>
    %4 = vector.broadcast %2 : i32 to vector<16x16xi32>
    %5 = arith.addi %3, %4 : vector<16x16xi32>
    %6 = tpu.iota {dimensions = array<i32: 1>} : vector<16x16xi32>
    %c15_i32 = arith.constant 15 : i32
    %7 = tpu.dynamic_rotate %1 by %c15_i32 dim 0 : vector<16x16xf32>, i32 -> vector<16x16xf32>
    %8 = arith.subf %1, %7 : vector<16x16xf32>
    %9 = math.absf %8 : vector<16x16xf32>
    %c15_i32_3 = arith.constant 15 : i32
    %10 = vector.broadcast %c15_i32_3 : i32 to vector<16x16xi32>
    %11 = arith.cmpi slt, %3, %10 : vector<16x16xi32>
    %c15_i32_4 = arith.constant 15 : i32
    %12 = vector.broadcast %c15_i32_4 : i32 to vector<16x16xi32>
    %13 = arith.cmpi slt, %5, %12 : vector<16x16xi32>
    %14 = arith.andi %11, %13 : vector<16x16xi1>
    %c15_i32_5 = arith.constant 15 : i32
    %15 = tpu.dynamic_rotate %1 by %c15_i32_5 dim 1 : vector<16x16xf32>, i32 -> vector<16x16xf32>
    %16 = arith.subf %1, %15 : vector<16x16xf32>
    %17 = math.absf %16 : vector<16x16xf32>
    %c15_i32_6 = arith.constant 15 : i32
    %18 = vector.broadcast %c15_i32_6 : i32 to vector<16x16xi32>
    %19 = arith.cmpi slt, %6, %18 : vector<16x16xi32>
    %c16_i32_7 = arith.constant 16 : i32
    %20 = vector.broadcast %c16_i32_7 : i32 to vector<16x16xi32>
    %21 = arith.cmpi slt, %5, %20 : vector<16x16xi32>
    %22 = arith.andi %19, %21 : vector<16x16xi1>
    %cst = arith.constant 0.000000e+00 : f32
    %23 = vector.broadcast %cst : f32 to vector<16x16xf32>
    %24 = arith.select %14, %9, %23 : vector<16x16xi1>, vector<16x16xf32>
    %cst_8 = arith.constant 0.000000e+00 : f32
    %25 = vector.broadcast %cst_8 : f32 to vector<16x16xf32>
    %26 = arith.select %22, %17, %25 : vector<16x16xi1>, vector<16x16xf32>
    %27 = arith.addf %24, %26 : vector<16x16xf32>
    %28 = vector.extract_strided_slice %1 {offsets = [0, 0], sizes = [1, 16], strides = [1, 1]} : vector<16x16xf32> to vector<1x16xf32>
    %c0_i32 = arith.constant 0 : i32
    %29 = arith.cmpi sgt, %arg2, %c0_i32 : i32
    %c0_9 = arith.constant 0 : index
    %c0_10 = arith.constant 0 : index
    %30 = vector.load %arg5[%c0_9, %c0_10] : memref<1x16xf32, #tpu.memory_space<vmem>>, vector<1x16xf32>
    %31 = arith.subf %28, %30 : vector<1x16xf32>
    %32 = math.absf %31 : vector<1x16xf32>
    %cst_11 = arith.constant 0.000000e+00 : f32
    %33 = vector.broadcast %cst_11 : f32 to vector<1x16xf32>
    %34 = arith.select %29, %32, %33 : vector<1x16xf32>
    %35 = vector.extract_strided_slice %1 {offsets = [15, 0], sizes = [1, 16], strides = [1, 1]} : vector<16x16xf32> to vector<1x16xf32>
    %c0_12 = arith.constant 0 : index
    %c0_13 = arith.constant 0 : index
    %36 = vector.load %arg5[%c0_12, %c0_13] : memref<1x16xf32, #tpu.memory_space<vmem>>, vector<1x16xf32>
    tpu.vector_store %arg5[%c0_12, %c0_13], %35 {strides = array<i32>} : memref<1x16xf32, #tpu.memory_space<vmem>>, vector<1x16xf32>,
    %cst_14 = arith.constant dense<0.000000e+00> : vector<16xf32>
    %37 = vector.multi_reduction <add>, %27, %cst_14 [0] : vector<16x16xf32> to vector<16xf32>
    %38 = vector.shape_cast %37 : vector<16xf32> to vector<1x16xf32>
    %39 = arith.addf %38, %34 : vector<1x16xf32>
    %c0_i32_15 = arith.constant 0 : i32
    %40 = arith.cmpi eq, %arg2, %c0_i32_15 : i32
    %41 = arith.extui %40 : i1 to i32
    %c0_i32_16 = arith.constant 0 : i32
    %42 = arith.cmpi ne, %41, %c0_i32_16 : i32
    scf.if %42 {
      %cst_25 = arith.constant 0.000000e+00 : f32
      %47 = vector.broadcast %cst_25 : f32 to vector<1x1x1x16xf32>
      %c0_26 = arith.constant 0 : index
      %c0_27 = arith.constant 0 : index
      %c0_28 = arith.constant 0 : index
      %c0_29 = arith.constant 0 : index
      %48 = vector.load %arg4[%c0_26, %c0_27, %c0_28, %c0_29] : memref<1x1x1x16xf32, #tpu.memory_space<vmem>>, vector<1x1x1x16xf32>
      tpu.vector_store %arg4[%c0_26, %c0_27, %c0_28, %c0_29], %47 {strides = array<i32>} : memref<1x1x1x16xf32, #tpu.memory_space<vmem>>, vector<1x1x1x16xf32>,
    } else {
    }
    %c0_17 = arith.constant 0 : index
    %c0_18 = arith.constant 0 : index
    %c0_19 = arith.constant 0 : index
    %c0_20 = arith.constant 0 : index
    %43 = vector.load %arg4[%c0_17, %c0_18, %c0_19, %c0_20] : memref<1x1x1x16xf32, #tpu.memory_space<vmem>>, vector<1x1x1x16xf32>
    %44 = vector.shape_cast %39 : vector<1x16xf32> to vector<1x1x1x16xf32>
    %45 = arith.addf %43, %44 : vector<1x1x1x16xf32>
    %c0_21 = arith.constant 0 : index
    %c0_22 = arith.constant 0 : index
    %c0_23 = arith.constant 0 : index
    %c0_24 = arith.constant 0 : index
    %46 = vector.load %arg4[%c0_21, %c0_22, %c0_23, %c0_24] : memref<1x1x1x16xf32, #tpu.memory_space<vmem>>, vector<1x1x1x16xf32>
    tpu.vector_store %arg4[%c0_21, %c0_22, %c0_23, %c0_24], %45 {strides = array<i32>} : memref<1x1x1x16xf32, #tpu.memory_space<vmem>>, vector<1x1x1x16xf32>,
    return
  }
  func.func @transform_0(%arg0: i32, %arg1: i32, %arg2: i32) -> (i32, i32, i32, i32) {
    %c2_i32 = arith.constant 2 : i32
    %0 = arith.muli %c2_i32, %arg1 : i32
    %c0_i32 = arith.constant 0 : i32
    %c0_i32_0 = arith.constant 0 : i32
    return %arg0, %0, %arg2, %c0_i32 : i32, i32, i32, i32
  }
  func.func @transform_1(%arg0: i32, %arg1: i32, %arg2: i32) -> (i32, i32, i32, i32) {
    %c0_i32 = arith.constant 0 : i32
    %c0_i32_0 = arith.constant 0 : i32
    %c0_i32_1 = arith.constant 0 : i32
    return %arg0, %arg1, %c0_i32, %c0_i32_0 : i32, i32, i32, i32
  }
}

</mosaic_0001>

<bundles_post_ra>
// kernel: tpu_custom_call.1
= control target key start
LH: loop header
LB: loop body
LE: loop exit
PB: predicated region body
PF: predicated region fallthrough
CT: control target
= control target key end

     0   :  { %6 = vsyncpa [#allocation4], 0  ;;  %s900_s0 = inlined_call_operand.hbm [shape: f32[2,4,16,16], index: 0, kind: input, shape index: {}]   ;;  %s901_s1 = inlined_call_operand.hbm [shape: f32[2,2,1,16], index: 1, kind: output, shape index: {}]  }
   0x1   :  { %8 = vsyncpa [#allocation4 + $0x1], 0 }
   0x2   :  { %9 = vsyncpa [#allocation5], 0 }
   0x3   :  { %11 = vsyncpa [#allocation5 + $0x1], 0  ;;  %s659_s6 = smov 0   ;;  %s661_s7 = smov 0  }
   0x4   :  { %s663_s8 = smov 0   ;;  %s665_s9 = smov 0  }
   0x5   :  { %s667_s10 = smov 0   ;;  %s669_s11 = smov 0  }
   0x6   :  { %s671_s12 = smov 0   ;;  %s673_s13 = smov 0  }
   0x7   :  { %s675_s14 = smov 0   ;;  %s677_s15 = smov 0  }
   0x8   :  { %s679_s16 = smov 0  }
   0x9 LB: > { %s363_s17 = sadd.s32 4294967295, %s640_s16   ;;  %s364_s18 = sadd.s32 4294967294, %s640_s16   ;;  %s640_s16 = sphi %s679_s16, %s17_s16   ;;  %s636_s15 = sphi %s677_s15, %s922_s15   ;;  %s632_s14 = sphi %s675_s14, %s921_s14   ;;  %s628_s13 = sphi %s673_s13, %s920_s13   ;;  %s624_s12 = sphi %s671_s12, %s919_s12   ;;  %s620_s11 = sphi %s669_s11, %s918_s11   ;;  %s616_s10 = sphi %s667_s10, %s917_s10   ;;  %s612_s9 = sphi %s665_s9, %s916_s9   ;;  %s608_s8 = sphi %s663_s8, %s915_s8   ;;  %s604_s7 = sphi %s661_s7, %s914_s7   ;;  %s600_s6 = sphi %s659_s6, %s913_s6  }
   0xa   : > { %s32_s19 = sadd.s32 1, %s632_s14  ;;  %s36_s20 = sadd.s32 1, %s636_s15 }
   0xb   : > { %p34_p0 = scmp.ge.s32.totalorder %s32_s19, 2  ;;  %s365_s21 = sshll.u32 %s632_s14, 1 }
   0xc   : > { %s49_s22 = sadd.s32 1, %s620_s11  ;;  %p56_p1 = scmp.ne.s32.totalorder %s620_s11, %s616_s10 }
   0xd   : > { %s924_s19 = smov (%p34_p0, %s32_s19), 0  ;;  %s926_s20 = smov (!%p34_p0, %s36_s20), %s636_s15 }
   0xe   : > { %s366_s23 = sshll.u32 %s924_s19, 1  ;;  %p57_p2 = scmp.eq.s32.totalorder %s640_s16, 0 }
   0xf   : > { %p38_p3 = scmp.ge.s32.totalorder %s926_s20, 2  ;;  %s43_s24 = ssub.s32 %s365_s21, %s366_s23 }
  0x10   : > { %p727_p4 = por %p57_p2, %p56_p1  ;;  %p62_p5 = scmp.ne.s32.totalorder %s616_s10, %s612_s9 }
  0x11   : > { %s928_s20 = smov (%p38_p3, %s926_s20), 0  ;;  %p63_p6 = scmp.eq.s32.totalorder %s363_s17, 0 }
  0x12   : > { %905 = sst [smem:[#allocation9_spill]] %s928_s20  ;;  %s73_s26 = ssub.s32 %s632_s14, %s924_s19 }
  0x13   : > { %s42_s27 = ssub.s32 %s636_s15, %s928_s20  ;;  %s77_s28 = sadd.s32 1, %s608_s8 }
  0x14   : > { %s44_s29 = sor.u32 %s43_s24, %s42_s27  ;;  %p742_p7 = por %p63_p6, %p62_p5 }
  0x15   : > { %p47_p8 = scmp.eq.s32.totalorder %s44_s29, 0  ;;  %s74_s2 = sor.u32 %s73_s26, %s42_s27 }
  0x16   : > { %p75_p9 = scmp.eq.s32.totalorder %s74_s2, 0  ;;  %p87_p10 = scmp.ne.s32.totalorder %s608_s8, %s604_s7 }
  0x17   : > { %s749_s3 = scalar_select %p47_p8, %s620_s11, %s49_s22  }
  0x18   : > { %s752_s4 = scalar_select %p75_p9, %s608_s8, %s77_s28  }
  0x19   : > { %p88_p11 = scmp.eq.s32.totalorder %s363_s17, 3  ;;  %p93_p12 = scmp.ne.s32.totalorder %s604_s7, %s600_s6 }
  0x1a   : > { %p94_p13 = scmp.eq.s32.totalorder %s364_s18, 3  ;;  %p393_p1 = scmp.lt.s32.totalorder %s640_s16, 4 }
  0x1b   : > { %p760_p0 = por %p88_p11, %p87_p10  ;;  %s114_s21 = sand.u32 1, %s620_s11  }
  0x1c   : > { %p765_p2 = por %p94_p13, %p93_p12  ;;  %s369_s22 = sshll.u32 %s114_s21, 4 }
  0x1d   : > { %s907_s5 = scalar_select %p760_p0, 1, 0 }
  0x1e   : > { %s908_s9 = scalar_select %p765_p2, 1, 0 }
  0x1f   : > { %s380_s23 = sshll.u32 %s632_s14, 2  ;;  %s372_s24 = sshll.u32 %s636_s15, 3 }
  0x20   : > { %s118_s26 = scalar_lea.vmem [#allocation3], %s369_s22  ;;  %s127_s28 = sadd.s32 %s380_s23, %s372_s24 }
  0x21   : > { %s130_s27 = sshll.u32 %s118_s26, 4  ;;  %s373_s17 = sshll.u32 %s127_s28, 7  ;;  %s772_s27 = int_to_ptr.vmem [resolvable:$true] %s130_s27 }
  0x22   : > { %p776_p3 = pnand %p393_p1, %p727_p4  ;;  %s783_s20 = scalar_lea.hbm %s900_s0, %s373_s17 }
  0x23   : > { %s785_s22 = scalar_lea.sflag [#allocation4], %s114_s21  ;;  %s488_s23 = scalar_lea.hbm %s783_s20, 256 }
  0x24   : > { %p489_p5 = scmp.ne.s32.totalorder %s783_s20, %s488_s23  ;;  %p490_p4 = pneg %p776_p3 }
  0x25   : > { %s493_s26 = scalar_lea.hbm %s900_s0, 2048  ;;  %p494_p9 = scmp.lt.u32.totalorder %s783_s20, %s900_s0 }
  0x26   : > { %p491_p6 = pnand %p490_p4, %p489_p5  ;;  %p495_p10 = scmp.lt.u32.totalorder %s493_s26, %s488_s23 }
  0x27   : > { %p497_p12 = scmp.lt.u32.totalorder %s488_s23, %s783_s20 }
  0x28   : > { %p492_p8 = pneg %p491_p6  ;;  %p496_p11 = por %p495_p10, %p494_p9 }
  0x2a   : > { %p498_p13 = por %p497_p12, %p496_p11 }
  0x2c   : > { %p499_p1 = pnand %p498_p13, %p492_p8 }
  0x2e   : > { %502 = shalt.err (!%p499_p1)
}
  0x2f   : > { %s503_s21 = scalar_lea.vmem %s772_s27, 256  ;;  %s642_s29 = smov [#allocation3]  }
  0x30   : > { %p504_p5 = scmp.ne.s32.totalorder %s772_s27, %s503_s21  ;;  %s508_s2 = sshll.u32 %s642_s29, 4  ;;  %s509_s2 = int_to_ptr.vmem [resolvable:$false] %s508_s2 }
  0x31   : > { %s510_s25 = scalar_lea.vmem %s509_s2, 512  ;;  %p511_p0 = scmp.lt.s32.totalorder %s772_s27, %s509_s2 }
  0x32   : > { %p506_p6 = pnand %p504_p5, %p490_p4  ;;  %p512_p9 = scmp.lt.s32.totalorder %s510_s25, %s503_s21 }
  0x34   : > { %p507_p2 = pneg %p506_p6  ;;  %p513_p10 = por %p512_p9, %p511_p0 }
  0x36   : > { %p514_p11 = pnand %p513_p10, %p507_p2 }
  0x38   : > { %517 = shalt.err (!%p514_p11)
}
  0x39   : > { %s643_s23 = smov 128   ;;  %s644_s24 = smov 8  }
  0x3a   : > { %388 = dma.hbm_to_vmem [thread:$0]  (!%p776_p3), %s783_s20, 256, %s772_s27, %s785_s22, %s643_s23, %s643_s23, %s644_s24  }
  0x3b   : > { %p374_p4 = scmp.ge.s32.totalorder %s640_s16, 1  ;;  %p138_p8 = scmp.lt.s32.totalorder %s640_s16, 5 }
  0x3d   : > { %p139_p12 = pnand %p374_p4, %p138_p8 }
  0x3e   : > { %s144_s26 = sand.u32 (!%p139_p12), 1, %s616_s10  }
  0x3f   : > { %142 = sbr.rel (%p139_p12) target bundleno = 461 (0x1cd), region = 24  ;;  %s375_s28 = sshll.u32 (!%p139_p12), %s144_s26, 4 }
  0x40   : > { %s145_s17 = scalar_lea.sflag (!%p139_p12), [#allocation4], %s144_s26  ;;  %s148_s21 = scalar_lea.vmem (!%p139_p12), [#allocation3], %s375_s28 }
  0x46   : > { %591 = dma.done.wait (%p742_p7), %s145_s17, 256  }
  0x47   : > { %593 = vsyncadd (%p742_p7), %s145_s17, 4294967040  ;;  %v169_v0 = vld [vmem:[%s148_s21 + $0x8] sm:$0xff]  ;;  %v168_v1 = vld [vmem:[%s148_s21] sm:$0xff]  ;;  %s645_s29 = smov 16   ;;  %vm194_vm0 = vcmask 1047680   ;;  %s646_s20 = smov 127   ;;  %v171_v11 = vlaneseq }
  0x48   : > { %195 = vrot.lane.b32.xlu0 %v168_v1, %s645_s29  ;;  %s164_s30 = sand.u32 1, %s604_s7   ;;  %vm255_vm1 = vcmask 122880   ;;  %v647_v10 = vmov 0.0   ;;  %v180_v13 = vrot.slane %v169_v0, 1  ;;  %v179_v14 = vrot.slane %v168_v1, 1  ;;  %s376_s18 = sshll.u32 %s628_s13, 1 }
  0x49   : > { %s823_s27 = scalar_lea.vmem [#allocation6], %s164_s30  ;;  %v172_v12 = vshrl.u32 %v171_v11, 7  ;;  %v178_v18 = vand.u32 127, %v171_v11  ;;  %vm240_vm6 = vcmask 130048   ;;  %s272_s22 = sadd.s32 %s624_s12, %s376_s18 }
  0x4a   : > { %256 = vst.msk [vmem:[%s823_s27] sm:$0x1] %vm255_vm1, %v647_v10  ;;  %s377_s2 = sshll.u32 %s272_s22, 4  ;;  %s276_s25 = sshll.u32 %s823_s27, 4  ;;  %s836_s25 = int_to_ptr.vmem [resolvable:$true] %s276_s25 }
  0x4b   : > { %vm181_vm2 = vcmp.lt.s32.totalorder %v172_v12, 7  ;;  %v173_v17 = vadd.s32 8, %v172_v12  ;;  %vm219_vm4 = vcmp.lt.s32.totalorder %v178_v18, 15  ;;  %s834_s26 = scalar_lea.hbm %s901_s1, %s377_s2  ;;  %s262_s12 = scalar_lea.sflag [#allocation5], %s164_s30 }
  0x4c   : > { %198 = vrot.lane.b32.xlu0 %v169_v0, %s645_s29  ;;  %v183_v15 = vsel %vm181_vm2, %v180_v13, %v179_v14  ;;  %v182_v16 = vsel %vm181_vm2, %v179_v14, %v180_v13  ;;  %s518_s13 = scalar_lea.vmem %s836_s25, 16  ;;  %p910_p0 = scmp.ne.s32.totalorder %s907_s5, 0 }
  0x4d   : > { %v185_v19 = vsub.f32 %v169_v0, %v183_v15  ;;  %v184_v21 = vsub.f32 %v168_v1, %v182_v16  ;;  %vm189_vm3 = vcmp.lt.s32.totalorder %v173_v17, 15  ;;  %p519_p7 = scmp.ne.s32.totalorder %s836_s25, %s518_s13  ;;  %s648_s28 = smov [#allocation6]  }
  0x4e   : > { %vm193_vm5 = vmand %vm189_vm3, %vm189_vm3  ;;  %s522_s17 = sshll.u32 %s648_s28, 4  ;;  %s523_s17 = int_to_ptr.vmem [resolvable:$false] %s522_s17 }
  0x4f   : > { %v187_v24 = vand.u32 2147483647, %v185_v19  ;;  %v186_v25 = vand.u32 2147483647, %v184_v21  ;;  %p520_p2 = pnand %p519_p7, %p910_p0  ;;  %s524_s21 = scalar_lea.vmem %s523_s17, 32 }
  0x50   : > { %p525_p13 = scmp.lt.s32.totalorder %s836_s25, %s523_s17  ;;  %p526_p1 = scmp.lt.s32.totalorder %s524_s21, %s518_s13 }
  0x51   : > { %v225_v30 = vsel %vm193_vm5, %v187_v24, 0.0  ;;  %v257_v42 = vld [vmem:[%s823_s27] sm:$0x1]  ;;  %p521_p3 = pneg %p520_p2 }
  0x52   : > { %p527_p5 = por %p526_p1, %p525_p13 }
  0x54   : > { %p528_p6 = pnand %p527_p5, %p521_p3 }
  0xba   : > { %v196_v2 = vpop.permute.xlu0 %195 }
  0xbb   : > { %v197_v3 = vsel %vm194_vm0, %v196_v2, %v168_v1 }
  0xbc   : > { %201 = vrot.lane.b32.xlu1 %v197_v3, %s645_s29 }
  0xbe   : > { %v199_v4 = vpop.permute.xlu0 %198 }
  0xbf   : > { %v200_v5 = vsel %vm194_vm0, %v199_v4, %v169_v0 }
  0xc0   : > { %203 = vrot.lane.b32.xlu1 %v200_v5, %s645_s29 }
 0x12e   : > { %v202_v6 = vpop.permute.xlu1 %201 }
 0x12f   : > { %v205_v7 = vsel %vm194_vm0, %v202_v6, %v168_v1 }
 0x130   : > { %209 = vrot.lane.b32.xlu0 %v205_v7, %s646_s20 }
 0x132   : > { %v204_v8 = vpop.permute.xlu1 %203 }
 0x133   : > { %v206_v9 = vsel %vm194_vm0, %v204_v8, %v169_v0 }
 0x134   : > { %211 = vrot.lane.b32.xlu1 %v206_v9, %s646_s20 }
 0x1a2   : > { %v210_v20 = vpop.permute.xlu0 %209 }
 0x1a3   : > { %v215_v22 = vsub.f32 %v168_v1, %v210_v20 }
 0x1a5   : > { %v217_v23 = vand.u32 2147483647, %v215_v22 }
 0x1a6   : > { %v212_v26 = vpop.permute.xlu1 %211 }
 0x1a7   : > { %v226_v27 = vsel %vm219_vm4, %v217_v23, 0.0  ;;  %v216_v28 = vsub.f32 %v169_v0, %v212_v26 }
 0x1a8   : > { %v228_v31 = vadd.f32 %v226_v27, %v186_v25 }
 0x1a9   : > { %v218_v29 = vand.u32 2147483647, %v216_v28 }
 0x1aa   : > { %v241_v34 = vsel %vm240_vm6, %v228_v31, 0.0 }
 0x1ab   : > { %v227_v32 = vsel %vm219_vm4, %v218_v29, 0.0 }
 0x1ac   : > { %v229_v33 = vadd.f32 %v227_v32, %v225_v30 }
 0x1ae   : > { %v242_v35 = vsel %vm240_vm6, %v229_v33, 0.0 }
 0x1af   : > { %v243_v36 = vadd.f32 %v242_v35, %v241_v34 }
 0x1b1   : > { %v244_v37 = vrot.slane %v243_v36, 4 }
 0x1b3   : > { %v245_v38 = vadd.f32 %v244_v37, %v243_v36 }
 0x1b5   : > { %v246_v39 = vrot.slane %v245_v38, 2 }
 0x1b7   : > { %v247_v40 = vadd.f32 %v246_v39, %v245_v38 }
 0x1b9   : > { %v248_v41 = vrot.slane %v247_v40, 1 }
 0x1bb   : > { %v249_v43 = vadd.f32 %v248_v41, %v247_v40 }
 0x1bd   : > { %v258_v44 = vadd.f32 %v257_v42, %v249_v43 }
 0x1bf   : > { %260 = vst.msk [vmem:[%s823_s27] sm:$0x1] %vm255_vm1, %v258_v44 }
 0x1c0   : > { %531 = shalt.err (!%p528_p6)
}
 0x1c1   : > { %s532_s29 = scalar_lea.hbm %s834_s26, 16  ;;  %s536_s27 = scalar_lea.hbm %s901_s1, 64 }
 0x1c2   : > { %p533_p9 = scmp.ne.s32.totalorder %s834_s26, %s532_s29  ;;  %p537_p4 = scmp.lt.u32.totalorder %s834_s26, %s901_s1 }
 0x1c3   : > { %p538_p8 = scmp.lt.u32.totalorder %s536_s27, %s532_s29  ;;  %p540_p7 = scmp.lt.u32.totalorder %s532_s29, %s834_s26 }
 0x1c4   : > { %p534_p10 = pnand %p533_p9, %p910_p0 }
 0x1c5   : > { %p539_p12 = por %p538_p8, %p537_p4 }
 0x1c6   : > { %p535_p11 = pneg %p534_p10 }
 0x1c7   : > { %p541_p2 = por %p540_p7, %p539_p12 }
 0x1c9   : > { %p542_p3 = pnand %p541_p2, %p535_p11 }
 0x1cb   : > { %545 = shalt.err (!%p542_p3)
}
 0x1cc   : > { %383 = dma.vmem_to_hbm [thread:$0]  (%p910_p0), %s836_s25, 16, %s834_s26, %s262_s12  }
 0x1cd PF: > { %p394_p13 = scmp.ge.s32.totalorder %s640_s16, 2  ;;  %s288_s2 = sand.u32 1, %s600_s6  }
 0x1ce   : > { %p911_p1 = scmp.ne.s32.totalorder %s908_s9, 0  ;;  %s289_s23 = scalar_lea.sflag [#allocation5], %s288_s2 }
 0x1d0   : > { %p390_p5 = pnand %p394_p13, %p911_p1 }
 0x1d2   : > { %595 = dma.done.wait (!%p390_p5), %s289_s23, 16  }
 0x1d3   : > { %597 = vsyncadd (!%p390_p5), %s289_s23, 4294967280  ;;  %s17_s16 = sadd.s32 1, %s640_s16   ;;  %s912_s5 = sld [smem:[#allocation9_spill]] }
 0x1d4   : > { %p14_p6 = scmp.ge.s32.totalorder %s17_s16, 6   ;;  %s913_s6 = smov %s604_s7 }
 0x1d5   : > { %s914_s7 = smov %s608_s8  ;;  %s915_s8 = smov %s752_s4 }
 0x1d6   : > { %s916_s9 = smov %s616_s10  ;;  %s917_s10 = smov %s620_s11 }
 0x1d7   : > { %s918_s11 = smov %s749_s3  ;;  %s919_s12 = smov %s632_s14 }
 0x1d8   : > { %s920_s13 = smov %s636_s15  ;;  %s921_s14 = smov %s924_s19 }
 0x1d9   : > { %s922_s15 = smov %s912_s5  ;;  %16 = sbr.rel (!%p14_p6) target bundleno = 9 (0x9), region = 73 }
 0x1e0   :  { %293 = vsyncpa [#allocation4], 1 }
 0x1e1   :  { %295 = vsyncpa [#allocation4 + $0x1], 1 }
 0x1e2   :  { %296 = vsyncpa [#allocation5], 1 }
 0x1e3   :  { %298 = vsyncpa [#allocation5 + $0x1], 1 }

</bundles_post_ra>
